<compile_context>
chip_gen: v5e
topology: v5e:2x2
jax: 0.10.0
libtpu: 0.0.40
codegen_flags: <defaults>
</compile_context>

<pallas_src>
import functools

import jax
import jax.numpy as jnp
from jax import lax
from jax.experimental import pallas as pl
from jax.experimental.pallas import tpu as pltpu


def _round_up(v, m):
    return ((v + m - 1) // m) * m


def _default_num_partials(num_blocks):
    """2 partial sums only on chips with 2 TensorCores (v7x); else 1.

    On single-TC v5e/v6e the leading 'parallel' axis is just a serial loop and
    an odd block count would force a fully-masked duplicate-block re-DMA.
    """
    if num_blocks < 2:
        return 1
    try:
        kind = jax.devices()[0].device_kind.lower()
    except Exception:  # defensive: unknown backend / mock devices
        return 1
    return 2 if "7" in kind else 1


def _mse_kernel(x_ref, y_ref, o_ref, acc_ref, *, nc, hw, row_block, col_block,
                s_steps, inv_denom, need_row_mask, need_col_mask):
    """Accumulates sum((x-y)^2) over the two trailing (reduction) grid axes."""
    s = pl.program_id(1)          # row-block step within this partial
    c = pl.program_id(2)          # column-block step

    @pl.when(jnp.logical_and(s == 0, c == 0))
    def _():
        acc_ref[...] = jnp.zeros_like(acc_ref)

    d = x_ref[...].astype(jnp.float32) - y_ref[...].astype(jnp.float32)
    sq = d * d

    def accumulate(vals):
        # Vreg-aligned sublane fold: (row_block, cb) -> (row_block//8, 8, cb)
        # summed over the leading dim lowers to pure VPU vreg adds, so the
        # VMEM-resident accumulator stays a single small (8, cb) tile.
        acc_ref[...] += vals.reshape(row_block // 8, 8, col_block).sum(axis=0)

    if not (need_row_mask or need_col_mask):
        accumulate(sq)                    # no padding possible: never mask
    else:
        blk = pl.program_id(0) * s_steps + s      # logical (unclamped) block id
        row0 = blk * row_block
        col0 = c * col_block
        conds = []
        if need_row_mask:
            conds.append(row0 + row_block > nc)
        if need_col_mask:
            conds.append(col0 + col_block > hw)
        boundary = conds[0]
        for extra in conds[1:]:
            boundary = jnp.logical_or(boundary, extra)

        @pl.when(jnp.logical_not(boundary))
        def _():                                   # fast path: interior block
            accumulate(sq)

        @pl.when(boundary)
        def _():                                   # tail / duplicate block
            masked = sq
            if need_row_mask:
                row_ids = lax.broadcasted_iota(
                    jnp.int32, (row_block, 1), 0) + row0
                masked = jnp.where(row_ids < nc, masked, 0.0)
            if need_col_mask:
                col_ids = lax.broadcasted_iota(
                    jnp.int32, (1, col_block), 1) + col0
                masked = jnp.where(col_ids < hw, masked, 0.0)
            accumulate(masked)

    @pl.when(jnp.logical_and(s == pl.num_programs(1) - 1,
                             c == pl.num_programs(2) - 1))
    def _():
        # Single cross-sublane + cross-lane reduction per output partial.
        part = jnp.sum(acc_ref[...], axis=0, keepdims=True)      # (1, cb)
        o_ref[...] = jnp.sum(part, axis=1, keepdims=True) * inv_denom


def loss_heatmap_mse(x, y, *, row_block=None, col_block=None, num_parts=None,
                     target_block_bytes=8 * 1024 * 1024):
    assert x.shape == y.shape, "x and y must have identical shapes"
    n, c, h, w = x.shape
    nc, hw = n * c, h * w

    # Free reshape (collapsing contiguous dims); no dtype upcast here.
    x2 = x.reshape(nc, hw)
    y2 = y.reshape(nc, hw)
    itemsize = x2.dtype.itemsize
    acc_itemsize = 4          # f32 accumulator

    # --- lane (hw) blocking: only when even an 8-row block of the full lane
    # extent (or its f32 accumulator) would blow the per-block budget. ---
    if col_block is None:
        if 8 * hw * max(itemsize, acc_itemsize) <= target_block_bytes:
            col_block = hw                               # full lane extent
        else:
            cb = target_block_bytes // (8 * max(itemsize, acc_itemsize))
            cb = max(128, (cb // 128) * 128)
            col_block = int(min(cb, _round_up(hw, 128)))
    assert col_block == hw or col_block % 128 == 0

    # --- sublane (nc) blocking: ~target_block_bytes per input block. ---
    if row_block is None:
        rb = max(8, target_block_bytes // max(1, col_block * itemsize))
        rb = (rb // 8) * 8
        row_block = int(min(rb, _round_up(nc, 8)))
    assert row_block % 8 == 0

    num_blocks = int(pl.cdiv(nc, row_block))
    c_steps = int(pl.cdiv(hw, col_block))
    if num_parts is None:
        num_parts = _default_num_partials(num_blocks)
    num_parts = max(1, min(int(num_parts), num_blocks))
    s_steps = int(pl.cdiv(num_blocks, num_parts))

    # Masking is only traced in when padding / duplicate blocks can exist.
    need_row_mask = (nc % row_block != 0) or (num_parts * s_steps != num_blocks)
    need_col_mask = (hw % col_block != 0)

    def in_index(p, s, cc):
        # Clamp so logical blocks past the end re-read the last valid block
        # (their rows are fully masked in-kernel, contributing zero).
        return (jnp.minimum(p * s_steps + s, num_blocks - 1), cc)

    kernel = functools.partial(
        _mse_kernel, nc=nc, hw=hw, row_block=row_block, col_block=col_block,
        s_steps=s_steps, inv_denom=1.0 / float(n * c),
        need_row_mask=need_row_mask, need_col_mask=need_col_mask)

    partials = pl.pallas_call(
        kernel,
        out_shape=jax.ShapeDtypeStruct((num_parts, 1), jnp.float32),
        grid_spec=pltpu.PrefetchScalarGridSpec(
            num_scalar_prefetch=0,
            grid=(num_parts, s_steps, c_steps),
            in_specs=[
                pl.BlockSpec((row_block, col_block), in_index),
                pl.BlockSpec((row_block, col_block), in_index),
            ],
            # Output block is revisited across both reduction axes; each
            # partial-sum block belongs to one leading-axis slice.
            out_specs=pl.BlockSpec((1, 1), lambda p, s, cc: (p, 0)),
            scratch_shapes=[pltpu.VMEM((8, col_block), jnp.float32)],
        ),
        compiler_params=pltpu.CompilerParams(
            dimension_semantics=("parallel", "arbitrary", "arbitrary"),
            # 2 inputs x 2 pipeline buffers x <=8 MiB plus the small (8, cb)
            # f32 accumulator; 48 MiB is safe on v5e/v6e (128 MiB physical)
            # and v7x (64 MiB physical per TensorCore).
            vmem_limit_bytes=48 * 1024 * 1024,
        ),
        cost_estimate=pl.CostEstimate(
            flops=3 * nc * hw,
            transcendentals=0,
            bytes_accessed=2 * nc * hw * itemsize + num_parts * 4,
        ),
    )(x2, y2)

    return jnp.sum(partials)


def _reference(x, y):
    return jnp.mean(jnp.mean(jnp.sum(jnp.square(x - y), axis=(2, 3)), axis=1))


if __name__ == "__main__":
    key = jax.random.PRNGKey(0)
    k1, k2, k3, k4, k5, k6 = jax.random.split(key, 6)

    def check(got, want, name, tol=1e-5):
        got = jax.block_until_ready(got)
        assert jnp.allclose(got, want, rtol=tol, atol=tol), (name, got, want)

    # Test 1: module-sized example — single block, single partial, no masking.
    N, C, H, W = 2, 4, 16, 16
    x = jax.random.normal(k1, (N, C, H, W), dtype=jnp.float32)
    y = jax.random.normal(k2, (N, C, H, W), dtype=jnp.float32)
    check(loss_heatmap_mse(x, y), _reference(x, y), "basic")

    # Test 2: nc=36, row_block=16, 2 partials -> multi-group sublane fold,
    # tail-row masking AND a fully-masked clamped duplicate block.
    N2, C2, H2, W2 = 3, 12, 16, 16
    x2 = jax.random.normal(k3, (N2, C2, H2, W2), dtype=jnp.float32)
    y2 = jax.random.normal(k4, (N2, C2, H2, W2), dtype=jnp.float32)
    check(loss_heatmap_mse(x2, y2, row_block=16, num_parts=2),
          _reference(x2, y2), "row-mask + duplicate block")

    # Test 3: H*W not a multiple of 128 (hw=144), full-lane-extent block.
    N3, C3, H3, W3 = 2, 4, 12, 12
    x3 = jax.random.normal(k5, (N3, C3, H3, W3), dtype=jnp.float32)
    y3 = jax.random.normal(k6, (N3, C3, H3, W3), dtype=jnp.float32)
    check(loss_heatmap_mse(x3, y3), _reference(x3, y3), "hw % 128 != 0")

    # Test 4: forced lane blocking (col_block=128 over hw=144) -> column tail
    # masking path.
    check(loss_heatmap_mse(x3, y3, col_block=128), _reference(x3, y3),
          "lane blocking + col mask")

    # Test 5: bf16 inputs stream at native width, accumulate in f32 in-kernel.
    xb = x.astype(jnp.bfloat16)
    yb = y.astype(jnp.bfloat16)
    check(loss_heatmap_mse(xb, yb),
          _reference(xb.astype(jnp.float32), yb.astype(jnp.float32)),
          "bf16 inputs", tol=1e-4)

    print("KERNEL_OK")
</pallas_src>

<mosaic_0001>
module attributes {stable_mosaic.version = 11 : i64} {
  func.func @_mse_kernel(%arg0: i32, %arg1: i32, %arg2: i32, %arg3: memref<8x256xf32, #tpu.memory_space<vmem>>, %arg4: memref<8x256xf32, #tpu.memory_space<vmem>>, %arg5: memref<1x1xf32, #tpu.memory_space<vmem>>, %arg6: memref<8x256xf32, #tpu.memory_space<vmem>>) attributes {dimension_semantics = [#tpu.dimension_semantics<parallel>, #tpu.dimension_semantics<arbitrary>, #tpu.dimension_semantics<arbitrary>], iteration_bounds = array<i64: 1, 1, 1>, scalar_prefetch = 0 : i64, scratch_operands = 1 : i64, tpu.core_type = #tpu.core_type<tc>, window_params = [{transform_indices = @transform_0, window_bounds = array<i64: 8, 256>}, {transform_indices = @transform_1, window_bounds = array<i64: 8, 256>}, {transform_indices = @transform_2, window_bounds = array<i64: 1, 1>}]} {
    %c0_i32 = arith.constant 0 : i32
    %0 = arith.cmpi eq, %arg1, %c0_i32 : i32
    %c0_i32_0 = arith.constant 0 : i32
    %1 = arith.cmpi eq, %arg2, %c0_i32_0 : i32
    %2 = arith.andi %0, %1 : i1
    %3 = arith.extui %2 : i1 to i32
    %c0_i32_1 = arith.constant 0 : i32
    %4 = arith.cmpi ne, %3, %c0_i32_1 : i32
    scf.if %4 {
      %cst_12 = arith.constant 0.000000e+00 : f32
      %19 = vector.broadcast %cst_12 : f32 to vector<8x256xf32>
      %c0_13 = arith.constant 0 : index
      %c0_14 = arith.constant 0 : index
      %20 = vector.load %arg6[%c0_13, %c0_14] : memref<8x256xf32, #tpu.memory_space<vmem>>, vector<8x256xf32>
      tpu.vector_store %arg6[%c0_13, %c0_14], %19 {strides = array<i32>} : memref<8x256xf32, #tpu.memory_space<vmem>>, vector<8x256xf32>,
    } else {
    }
    %c0 = arith.constant 0 : index
    %c0_2 = arith.constant 0 : index
    %5 = vector.load %arg3[%c0, %c0_2] : memref<8x256xf32, #tpu.memory_space<vmem>>, vector<8x256xf32>
    %c0_3 = arith.constant 0 : index
    %c0_4 = arith.constant 0 : index
    %6 = vector.load %arg4[%c0_3, %c0_4] : memref<8x256xf32, #tpu.memory_space<vmem>>, vector<8x256xf32>
    %7 = arith.subf %5, %6 : vector<8x256xf32>
    %8 = arith.mulf %7, %7 : vector<8x256xf32>
    %c0_5 = arith.constant 0 : index
    %c0_6 = arith.constant 0 : index
    %9 = vector.load %arg6[%c0_5, %c0_6] : memref<8x256xf32, #tpu.memory_space<vmem>>, vector<8x256xf32>
    %10 = vector.shape_cast %8 : vector<8x256xf32> to vector<1x8x256xf32>
    %cst = arith.constant dense<0.000000e+00> : vector<8x256xf32>
    %11 = vector.multi_reduction <add>, %10, %cst [0] : vector<1x8x256xf32> to vector<8x256xf32>
    %12 = arith.addf %9, %11 : vector<8x256xf32>
    %c0_7 = arith.constant 0 : index
    %c0_8 = arith.constant 0 : index
    %13 = vector.load %arg6[%c0_7, %c0_8] : memref<8x256xf32, #tpu.memory_space<vmem>>, vector<8x256xf32>
    tpu.vector_store %arg6[%c0_7, %c0_8], %12 {strides = array<i32>} : memref<8x256xf32, #tpu.memory_space<vmem>>, vector<8x256xf32>,
    %c0_i32_9 = arith.constant 0 : i32
    %14 = arith.cmpi eq, %arg1, %c0_i32_9 : i32
    %c0_i32_10 = arith.constant 0 : i32
    %15 = arith.cmpi eq, %arg2, %c0_i32_10 : i32
    %16 = arith.andi %14, %15 : i1
    %17 = arith.extui %16 : i1 to i32
    %c0_i32_11 = arith.constant 0 : i32
    %18 = arith.cmpi ne, %17, %c0_i32_11 : i32
    scf.if %18 {
      %c0_12 = arith.constant 0 : index
      %c0_13 = arith.constant 0 : index
      %19 = vector.load %arg6[%c0_12, %c0_13] : memref<8x256xf32, #tpu.memory_space<vmem>>, vector<8x256xf32>
      %cst_14 = arith.constant dense<0.000000e+00> : vector<256xf32>
      %20 = vector.multi_reduction <add>, %19, %cst_14 [0] : vector<8x256xf32> to vector<256xf32>
      %21 = vector.shape_cast %20 : vector<256xf32> to vector<1x256xf32>
      %cst_15 = arith.constant dense<0.000000e+00> : vector<1xf32>
      %22 = vector.multi_reduction <add>, %21, %cst_15 [1] : vector<1x256xf32> to vector<1xf32>
      %23 = vector.shape_cast %22 : vector<1xf32> to vector<1x1xf32>
      %cst_16 = arith.constant 1.250000e-01 : f32
      %24 = vector.broadcast %cst_16 : f32 to vector<1x1xf32>
      %25 = arith.mulf %23, %24 : vector<1x1xf32>
      %c0_17 = arith.constant 0 : index
      %c0_18 = arith.constant 0 : index
      %26 = vector.load %arg5[%c0_17, %c0_18] : memref<1x1xf32, #tpu.memory_space<vmem>>, vector<1x1xf32>
      tpu.vector_store %arg5[%c0_17, %c0_18], %25 {strides = array<i32>} : memref<1x1xf32, #tpu.memory_space<vmem>>, vector<1x1xf32>,
    } else {
    }
    return
  }
  func.func @transform_0(%arg0: i32, %arg1: i32, %arg2: i32) -> (i32, i32) {
    %c1_i32 = arith.constant 1 : i32
    %0 = arith.muli %arg0, %c1_i32 : i32
    %1 = arith.addi %0, %arg1 : i32
    %c0_i32 = arith.constant 0 : i32
    %2 = arith.minsi %1, %c0_i32 : i32
    %c0_i32_0 = arith.constant 0 : i32
    return %2, %arg2 : i32, i32
  }
  func.func @transform_1(%arg0: i32, %arg1: i32, %arg2: i32) -> (i32, i32) {
    %c1_i32 = arith.constant 1 : i32
    %0 = arith.muli %arg0, %c1_i32 : i32
    %1 = arith.addi %0, %arg1 : i32
    %c0_i32 = arith.constant 0 : i32
    %2 = arith.minsi %1, %c0_i32 : i32
    %c0_i32_0 = arith.constant 0 : i32
    return %2, %arg2 : i32, i32
  }
  func.func @transform_2(%arg0: i32, %arg1: i32, %arg2: i32) -> (i32, i32) {
    %c0_i32 = arith.constant 0 : i32
    %c0_i32_0 = arith.constant 0 : i32
    return %arg0, %c0_i32 : i32, i32
  }
}

</mosaic_0001>

<bundles_post_ra>
// kernel: tpu_custom_call.1
= control target key start
LH: loop header
LB: loop body
LE: loop exit
PB: predicated region body
PF: predicated region fallthrough
CT: control target
= control target key end

     0   :  { %7 = vsyncpa [#allocation4], 0  ;;  %s234_s0 = inlined_call_operand.hbm [shape: f32[8,256], index: 0, kind: input, shape index: {}]   ;;  %s235_s1 = inlined_call_operand.hbm [shape: f32[8,256], index: 1, kind: input, shape index: {}]   ;;  %s236_s2 = inlined_call_operand.hbm [shape: f32[1,1], index: 2, kind: output, shape index: {}]  }
   0x1   :  { %8 = vsyncpa [#allocation7], 0 }
   0x2   :  { %9 = vsyncpa [#allocation5], 0  ;;  %s21_s11 = sshll.u32 %s234_s0, 4  ;;  %s207_s12 = smov [#allocation3]   ;;  %s22_s11 = int_to_ptr.hbm [resolvable:$true] %s21_s11 }
   0x3   :  { %s23_s13 = sshll.u32 %s207_s12, 4  ;;  %s38_s16 = sshll.u32 %s235_s1, 4  ;;  %s24_s13 = int_to_ptr.vmem [resolvable:$true] %s23_s13  ;;  %s39_s16 = int_to_ptr.hbm [resolvable:$true] %s38_s16 }
   0x4   :  { %26 = dma.hbm_to_vmem [thread:$0]  %s22_s11, 256, %s24_s13, [#allocation4]  }
   0x5   :  { %s208_s17 = smov [#allocation6]  }
   0x6   :  { %s40_s18 = sshll.u32 %s208_s17, 4  ;;  %s41_s18 = int_to_ptr.vmem [resolvable:$true] %s40_s18 }
   0x7   :  { %43 = dma.hbm_to_vmem [thread:$0]  %s39_s16, 256, %s41_s18, [#allocation7]  }
   0x8   :  { %201 = dma.done.wait [#allocation4], 256  }
   0x9   :  { %202 = vsyncadd [#allocation4], 4294967040 }
   0xa   :  { %203 = dma.done.wait [#allocation7], 256  }
   0xb   :  { %204 = vsyncadd [#allocation7], 4294967040  ;;  %v66_v0 = vld [vmem:[#allocation3] sm:$0xff]  ;;  %v67_v1 = vld [vmem:[#allocation3 + $0x8] sm:$0xff]  ;;  %s209_s0 = smov [#allocation8]   ;;  %s111_s21 = sshll.u32 %s236_s2, 4  ;;  %s112_s21 = int_to_ptr.hbm [resolvable:$true] %s111_s21 }
   0xc   :  { %v68_v2 = vld [vmem:[#allocation6] sm:$0xff]  ;;  %v69_v3 = vld [vmem:[#allocation6 + $0x8] sm:$0xff]  ;;  %s109_s1 = sshll.u32 %s209_s0, 4  ;;  %vm102_vm0 = vcmask 0   ;;  %s110_s1 = int_to_ptr.vmem [resolvable:$true] %s109_s1 }
   0xd   :  { %v70_v4 = vsub.f32 %v66_v0, %v68_v2  ;;  %v71_v5 = vsub.f32 %v67_v1, %v69_v3 }
   0xf   :  { %v72_v6 = vmul.f32 %v70_v4, %v70_v4  ;;  %v73_v7 = vmul.f32 %v71_v5, %v71_v5 }
  0x11   :  { %v86_v8 = vrot.slane %v72_v6, 4  ;;  %v92_v9 = vrot.slane %v73_v7, 4 }
  0x13   :  { %v87_v10 = vadd.f32 %v86_v8, %v72_v6  ;;  %v93_v11 = vadd.f32 %v92_v9, %v73_v7 }
  0x15   :  { %v88_v12 = vrot.slane %v87_v10, 2  ;;  %v94_v13 = vrot.slane %v93_v11, 2 }
  0x17   :  { %v89_v14 = vadd.f32 %v88_v12, %v87_v10  ;;  %v95_v15 = vadd.f32 %v94_v13, %v93_v11 }
  0x19   :  { %v90_v16 = vrot.slane %v89_v14, 1  ;;  %v96_v17 = vrot.slane %v95_v15, 1 }
  0x1b   :  { %v91_v18 = vadd.f32 %v90_v16, %v89_v14  ;;  %v97_v19 = vadd.f32 %v96_v17, %v95_v15 }
  0x1d   :  { %v98_v20 = vadd.f32 %v97_v19, %v91_v18 }
  0x1f   :  { %99 = vadd.xlane.f32.xlu0 %v98_v20 }
  0x92   :  { %v100_v21 = vpop.xlane.xlu0 %99 }
  0x93   :  { %v101_v22 = vmul.f32 0.125, %v100_v21 }
  0x95   :  { %103 = vst.msk [vmem:[#allocation8] sm:$0x1] %vm102_vm0, %v101_v22 }
  0x96   :  { %114 = dma.vmem_to_hbm [thread:$0]  %s110_s1, 16, %s112_s21, [#allocation5]  }
  0x97   :  { %205 = dma.done.wait [#allocation5], 16  }
  0x98   :  { %206 = vsyncadd [#allocation5], 4294967280 }
  0x99   :  { %119 = vsyncpa [#allocation4], 1 }
  0x9a   :  { %120 = vsyncpa [#allocation7], 1 }
  0x9b   :  { %121 = vsyncpa [#allocation5], 1 }

</bundles_post_ra>
